<compile_context>
chip_gen: v7x
topology: tpu7x:2x2x1
jax: 0.10.0
libtpu: 0.0.40
codegen_flags: <defaults>
</compile_context>

<pallas_src>
import math

import jax
import jax.numpy as jnp
import numpy as np
from jax import lax
from jax.experimental import pallas as pl
from jax.experimental.pallas import tpu as pltpu

EPS = 1e-6        # LayerNorm2d eps
KW = 2            # QnA window (kernel_size=2, stride=2, padding=0)


# --------------------------------------------------------------------------
# Fused kernel: LayerNorm2d (+folded ShiftAndScale) + QnA windowed attention
# --------------------------------------------------------------------------
def _qna_down_fused_kernel(xw_ref, ge_ref, be_ref, wv_ref, ws_ref,
                           emat_ref, wo_ref, bo_ref, o_ref):
    tp = o_ref.shape[2]                          # output positions in this tile

    # ---- LayerNorm over C; rows [0:tp] = window 0, [tp:2tp] = window 1 ----
    x = xw_ref[0]                                             # (2*tp, C) f32
    mean = jnp.mean(x, axis=-1, keepdims=True)
    xc = x - mean
    var = jnp.mean(xc * xc, axis=-1, keepdims=True)           # biased var (torch layer_norm)
    y = xc * lax.rsqrt(var + EPS) * ge_ref[0] + be_ref[0]     # affine + ShiftAndScale folded
    y16 = y.astype(jnp.bfloat16)

    # ---- two independent MXU matmuls from y (bf16 operands, f32 accumulate) ----
    # V projection; k-projection is never needed: its bias cancels in s0 - s1
    # and its weight is folded (with the per-batch query) into w_s in the wrapper.
    v = jnp.dot(y16, wv_ref[...], preferred_element_type=jnp.float32)    # (2*tp, hidden)
    s = jnp.dot(y16, ws_ref[0], preferred_element_type=jnp.float32)      # (2*tp, heads)

    v0, v1 = v[:tp], v[tp:]
    s0, s1 = s[:tp], s[tp:]

    # 2-way softmax == sigmoid of the score difference; clamp so exp never
    # overflows for trained weights (saturates exactly like the softmax would).
    diff = jnp.clip(s0 - s1, -60.0, 60.0)
    a0 = pl.reciprocal(1.0 + jnp.exp(-diff), approx=True)                # (tp, heads)

    # Expand per-head attention weight onto hidden lanes (tiny MXU matmul),
    # combine the two windows, then output-project with the unpadded w_o.
    a_exp = jnp.dot(a0, emat_ref[...], preferred_element_type=jnp.float32)  # (tp, hidden)
    agg = v1 + a_exp * (v0 - v1)                                            # a0*v0 + (1-a0)*v1

    out = jnp.dot(agg.astype(jnp.bfloat16), wo_ref[...],
                  preferred_element_type=jnp.float32) + bo_ref[...]      # (tp, hidden)

    # Store transposed -> lane-dense (hidden, tp) block; wrapper ends with a
    # pure reshape instead of an extra HBM transpose pass.
    o_ref[0] = out.T.astype(o_ref.dtype)


def _pick_tile_p(P, C, hidden, vmem_budget_bytes=40 << 20):
    """Largest tile of the position axis that divides P, keeps blocks legal
    (lane dim multiple of 128 or full axis; sublane split multiple of 8) and
    stays inside a conservative VMEM activation budget (v7x 64 MiB safe)."""
    def act_bytes(tp):
        x_blk = 2 * tp * C * 4                 # f32 input block
        out_blk = hidden * tp * 4              # f32 output block
        live = 2 * tp * hidden * 4 + 2 * tp * C * 4 + 3 * tp * hidden * 4
        return 2 * x_blk + 2 * out_blk + live  # x2 = double-buffering
    if P % 8 != 0:
        # TODO(synk): pad P to a multiple of 8 for exotic spatial sizes; the
        # full-axis fallback is correct but may relayout the in-kernel slices.
        return P
    if act_bytes(P) <= vmem_budget_bytes:
        return P
    best = None
    t = 128
    while t < P:
        if P % t == 0 and act_bytes(t) <= vmem_budget_bytes:
            best = t
        t += 128
    return best if best is not None else P


# --------------------------------------------------------------------------
# Wrapper
# --------------------------------------------------------------------------
def qna_down_block(params, x_nchw, temb, *, head_dim, use_timestep_query=True):
    N, C, H, W = x_nchw.shape
    hidden = params["w_o"].shape[0]
    heads = hidden // head_dim
    Wd = W // KW
    P = H * Wd
    TP = _pick_tile_p(P, C, hidden)
    nT = P // TP
    f32, bf16 = jnp.float32, jnp.bfloat16
    inv_sqrt_d = 1.0 / math.sqrt(head_dim)

    # ---- window-split channels-last input laid out as (N, nT*KW*TP, C): the
    #      kernel block is one contiguous (2*TP, C) slab (no in-kernel concat).
    xw = x_nchw.reshape(N, C, H, Wd, KW)
    xw = jnp.transpose(xw, (0, 2, 3, 4, 1))            # (N, H, Wd, KW, C)
    xw = xw.reshape(N, nT, TP, KW, C)
    xw = jnp.transpose(xw, (0, 1, 3, 2, 4))            # (N, nT, KW, TP, C)
    xw = xw.reshape(N, KW * P, C)

    # ---- per-batch conditioning; ShiftAndScale folded into the LN affine ----
    ct = jax.nn.silu(temb)
    cond = ct @ params["w_cond"] + params["b_cond"]                   # (N, 2C)
    shift, scale = cond[:, :C], cond[:, C:]
    gamma_eff = (params["gamma"][None, :] * (1.0 + scale)).reshape(N, 1, C)
    beta_eff = (params["beta"][None, :] * (1.0 + scale) + shift).reshape(N, 1, C)

    # ---- per-batch score weights: w_s[b] = w_k @ blockdiag(q_b) / sqrt(d) ----
    qflat = jnp.broadcast_to(params["q_base"].reshape(1, hidden), (N, hidden))
    if use_timestep_query:
        qflat = qflat + ct @ params["w_q"] + params["b_q"]
    q3 = qflat.reshape(N, heads, head_dim)
    wk3 = params["w_k"].reshape(C, heads, head_dim)
    w_s = (jnp.einsum("chd,nhd->nch", wk3, q3) * inv_sqrt_d).astype(bf16)  # (N, C, heads)

    # ---- constant per-head -> hidden-lane expansion matrix ----
    emat = jnp.asarray(
        (np.arange(hidden)[None, :] // head_dim ==
         np.arange(heads)[:, None]).astype(np.float32))                    # (heads, hidden)

    w_v = params["w_v"].astype(bf16)                                       # (C, hidden)
    w_o = params["w_o"].astype(bf16)                                       # (hidden, hidden)
    b_o_eff = (params["b_v"] @ params["w_o"] + params["b_o"]).reshape(1, hidden)  # f32

    out = pl.pallas_call(
        _qna_down_fused_kernel,
        out_shape=jax.ShapeDtypeStruct((N, hidden, P), f32),
        grid=(N, nT),
        in_specs=[
            pl.BlockSpec((1, KW * TP, C), lambda b, t: (b, t, 0)),
            pl.BlockSpec((1, 1, C), lambda b, t: (b, 0, 0)),
            pl.BlockSpec((1, 1, C), lambda b, t: (b, 0, 0)),
            pl.BlockSpec((C, hidden), lambda b, t: (0, 0)),
            pl.BlockSpec((1, C, heads), lambda b, t: (b, 0, 0)),
            pl.BlockSpec((heads, hidden), lambda b, t: (0, 0)),
            pl.BlockSpec((hidden, hidden), lambda b, t: (0, 0)),
            pl.BlockSpec((1, hidden), lambda b, t: (0, 0)),
        ],
        out_specs=pl.BlockSpec((1, hidden, TP), lambda b, t: (b, 0, t)),
        compiler_params=pltpu.CompilerParams(
            dimension_semantics=("parallel", "parallel"),
            vmem_limit_bytes=48 * 1024 * 1024),
    )(xw, gamma_eff, beta_eff, w_v, w_s, emat, w_o, b_o_eff)

    # positions p = h*Wd + wd -> pure reshape back to NCHW (no HBM transpose)
    return out.reshape(N, hidden, H, Wd)


# --------------------------------------------------------------------------
# Pure-JAX f32 reference (original module math, no folding) for correctness
# --------------------------------------------------------------------------
def reference(params, x_nchw, temb, *, head_dim, use_timestep_query=True):
    N, C, H, W = x_nchw.shape
    hidden = params["w_o"].shape[0]
    heads = hidden // head_dim
    Wd = W // KW
    P = H * Wd

    x = jnp.transpose(x_nchw, (0, 2, 3, 1))
    mean = jnp.mean(x, -1, keepdims=True)
    var = jnp.mean((x - mean) ** 2, -1, keepdims=True)
    xn = (x - mean) / jnp.sqrt(var + EPS) * params["gamma"] + params["beta"]

    ct = jax.nn.silu(temb)
    cond = ct @ params["w_cond"] + params["b_cond"]
    shift, scale = cond[:, :C], cond[:, C:]
    xm = xn * (1.0 + scale[:, None, None, :]) + shift[:, None, None, :]

    xw = xm.reshape(N, P, KW, C)
    k = xw @ params["w_k"] + params["b_k"]
    v = xw @ params["w_v"] + params["b_v"]

    qflat = jnp.broadcast_to(params["q_base"].reshape(1, hidden), (N, hidden))
    if use_timestep_query:
        qflat = qflat + ct @ params["w_q"] + params["b_q"]
    q = qflat.reshape(N, heads, head_dim)

    k4 = k.reshape(N, P, KW, heads, head_dim)
    v4 = v.reshape(N, P, KW, heads, head_dim)
    s = jnp.einsum("npwhd,nhd->npwh", k4, q) / math.sqrt(head_dim)
    a = jax.nn.softmax(s, axis=2)
    o = jnp.einsum("npwh,npwhd->nphd", a, v4).reshape(N, P, hidden)
    o = o @ params["w_o"] + params["b_o"]
    o = o.reshape(N, H, Wd, hidden)
    return jnp.transpose(o, (0, 3, 1, 2))


def init_params(key, C, hidden, tf, head_dim):
    ks = jax.random.split(key, 12)
    s = 0.05
    heads = hidden // head_dim
    return {
        "gamma": 1.0 + 0.1 * jax.random.normal(ks[0], (C,), jnp.float32),
        "beta": 0.1 * jax.random.normal(ks[1], (C,), jnp.float32),
        "w_cond": s * jax.random.normal(ks[2], (tf, 2 * C), jnp.float32),
        "b_cond": s * jax.random.normal(ks[3], (2 * C,), jnp.float32),
        "w_k": s * jax.random.normal(ks[4], (C, hidden), jnp.float32),
        "b_k": s * jax.random.normal(ks[5], (hidden,), jnp.float32),
        "w_v": s * jax.random.normal(ks[6], (C, hidden), jnp.float32),
        "b_v": s * jax.random.normal(ks[7], (hidden,), jnp.float32),
        "q_base": jax.random.normal(ks[8], (heads, head_dim), jnp.float32),
        "w_q": s * jax.random.normal(ks[9], (tf, hidden), jnp.float32),
        "b_q": s * jax.random.normal(ks[10], (hidden,), jnp.float32),
        "w_o": s * jax.random.normal(ks[11], (hidden, hidden), jnp.float32),
        "b_o": jnp.zeros((hidden,), jnp.float32),
    }


if __name__ == "__main__":
    key = jax.random.PRNGKey(0)
    # channels=32, out_channels(hidden)=64, head_dim=16 -> heads=4,
    # timesteps_features=32, spatial (H, W) = (4, 16), batch=2
    N, C, H, W = 2, 32, 4, 16
    hidden, head_dim, tf = 64, 16, 32

    k1, k2, k3 = jax.random.split(key, 3)
    x = jax.random.normal(k1, (N, C, H, W), jnp.float32)
    temb = jax.random.normal(k2, (N, tf), jnp.float32)
    params = init_params(k3, C, hidden, tf, head_dim)

    out = qna_down_block(params, x, temb, head_dim=head_dim, use_timestep_query=True)
    out = jax.block_until_ready(out)

    assert out.shape == (N, hidden, H, W // KW), out.shape
    ref = reference(params, x, temb, head_dim=head_dim, use_timestep_query=True)
    err = float(jnp.max(jnp.abs(out - ref)))
    # bf16 MXU operands + approx reciprocal -> error floor ~1e-3.
    assert err < 2e-2, f"kernel/reference mismatch: max abs err = {err}"

    print("KERNEL_OK")
</pallas_src>

<mosaic_0001>
module attributes {stable_mosaic.version = 11 : i64} {
  func.func @_qna_down_fused_kernel(%arg0: i32, %arg1: i32, %arg2: memref<1x64x32xf32, #tpu.memory_space<vmem>>, %arg3: memref<1x1x32xf32, #tpu.memory_space<vmem>>, %arg4: memref<1x1x32xf32, #tpu.memory_space<vmem>>, %arg5: memref<32x64xbf16, #tpu.memory_space<vmem>>, %arg6: memref<1x32x4xbf16, #tpu.memory_space<vmem>>, %arg7: memref<4x64xf32, #tpu.memory_space<vmem>>, %arg8: memref<64x64xbf16, #tpu.memory_space<vmem>>, %arg9: memref<1x64xf32, #tpu.memory_space<vmem>>, %arg10: memref<1x64x32xf32, #tpu.memory_space<vmem>>) attributes {dimension_semantics = [#tpu.dimension_semantics<parallel>, #tpu.dimension_semantics<parallel>], iteration_bounds = array<i64: 2, 1>, scalar_prefetch = 0 : i64, scratch_operands = 0 : i64, tpu.core_type = #tpu.core_type<tc>, window_params = [{transform_indices = @transform_0, window_bounds = array<i64: 1, 64, 32>}, {transform_indices = @transform_1, window_bounds = array<i64: 1, 1, 32>}, {transform_indices = @transform_2, window_bounds = array<i64: 1, 1, 32>}, {pipeline_mode = #tpu.pipeline_mode<synchronous>, transform_indices = @transform_3, window_bounds = array<i64: 32, 64>}, {transform_indices = @transform_4, window_bounds = array<i64: 1, 32, 4>}, {pipeline_mode = #tpu.pipeline_mode<synchronous>, transform_indices = @transform_5, window_bounds = array<i64: 4, 64>}, {pipeline_mode = #tpu.pipeline_mode<synchronous>, transform_indices = @transform_6, window_bounds = array<i64: 64, 64>}, {pipeline_mode = #tpu.pipeline_mode<synchronous>, transform_indices = @transform_7, window_bounds = array<i64: 1, 64>}, {transform_indices = @transform_8, window_bounds = array<i64: 1, 64, 32>}]} {
    %c0 = arith.constant 0 : index
    %c0_0 = arith.constant 0 : index
    %c0_1 = arith.constant 0 : index
    %0 = vector.load %arg2[%c0, %c0_0, %c0_1] : memref<1x64x32xf32, #tpu.memory_space<vmem>>, vector<1x64x32xf32>
    %1 = vector.shape_cast %0 : vector<1x64x32xf32> to vector<64x32xf32>
    %cst = arith.constant dense<0.000000e+00> : vector<64xf32>
    %2 = vector.multi_reduction <add>, %1, %cst [1] : vector<64x32xf32> to vector<64xf32>
    %3 = vector.shape_cast %2 : vector<64xf32> to vector<64x1xf32>
    %cst_2 = arith.constant 3.200000e+01 : f32
    %4 = vector.broadcast %cst_2 : f32 to vector<64x1xf32>
    %5 = arith.divf %3, %4 : vector<64x1xf32>
    %6 = vector.broadcast %5 : vector<64x1xf32> to vector<64x32xf32>
    %7 = arith.subf %1, %6 : vector<64x32xf32>
    %8 = arith.mulf %7, %7 : vector<64x32xf32>
    %cst_3 = arith.constant dense<0.000000e+00> : vector<64xf32>
    %9 = vector.multi_reduction <add>, %8, %cst_3 [1] : vector<64x32xf32> to vector<64xf32>
    %10 = vector.shape_cast %9 : vector<64xf32> to vector<64x1xf32>
    %cst_4 = arith.constant 3.200000e+01 : f32
    %11 = vector.broadcast %cst_4 : f32 to vector<64x1xf32>
    %12 = arith.divf %10, %11 : vector<64x1xf32>
    %cst_5 = arith.constant 9.99999997E-7 : f32
    %13 = vector.broadcast %cst_5 : f32 to vector<64x1xf32>
    %14 = arith.addf %12, %13 : vector<64x1xf32>
    %15 = math.rsqrt %14 : vector<64x1xf32>
    %16 = vector.broadcast %15 : vector<64x1xf32> to vector<64x32xf32>
    %17 = arith.mulf %7, %16 : vector<64x32xf32>
    %c0_6 = arith.constant 0 : index
    %c0_7 = arith.constant 0 : index
    %c0_8 = arith.constant 0 : index
    %18 = vector.load %arg3[%c0_6, %c0_7, %c0_8] : memref<1x1x32xf32, #tpu.memory_space<vmem>>, vector<1x1x32xf32>
    %19 = vector.shape_cast %18 : vector<1x1x32xf32> to vector<1x32xf32>
    %20 = vector.broadcast %19 : vector<1x32xf32> to vector<64x32xf32>
    %21 = arith.mulf %17, %20 : vector<64x32xf32>
    %c0_9 = arith.constant 0 : index
    %c0_10 = arith.constant 0 : index
    %c0_11 = arith.constant 0 : index
    %22 = vector.load %arg4[%c0_9, %c0_10, %c0_11] : memref<1x1x32xf32, #tpu.memory_space<vmem>>, vector<1x1x32xf32>
    %23 = vector.shape_cast %22 : vector<1x1x32xf32> to vector<1x32xf32>
    %24 = vector.broadcast %23 : vector<1x32xf32> to vector<64x32xf32>
    %25 = arith.addf %21, %24 : vector<64x32xf32>
    %26 = arith.truncf %25 : vector<64x32xf32> to vector<64x32xbf16>
    %c0_12 = arith.constant 0 : index
    %c0_13 = arith.constant 0 : index
    %27 = vector.load %arg5[%c0_12, %c0_13] : memref<32x64xbf16, #tpu.memory_space<vmem>>, vector<32x64xbf16>
    %cst_14 = arith.constant dense<0.000000e+00> : vector<64x64xf32>
    %28 = tpu.matmul %26, %27, %cst_14 {dimension_numbers = #tpu.dot_dimension_numbers<[1], [0], [0], [1], [0, 0, 1, 1], [], []>} : vector<64x32xbf16>, vector<32x64xbf16>, vector<64x64xf32> -> vector<64x64xf32>
    %c0_15 = arith.constant 0 : index
    %c0_16 = arith.constant 0 : index
    %c0_17 = arith.constant 0 : index
    %29 = vector.load %arg6[%c0_15, %c0_16, %c0_17] : memref<1x32x4xbf16, #tpu.memory_space<vmem>>, vector<1x32x4xbf16>
    %30 = vector.shape_cast %29 : vector<1x32x4xbf16> to vector<32x4xbf16>
    %cst_18 = arith.constant dense<0.000000e+00> : vector<64x4xf32>
    %31 = tpu.matmul %26, %30, %cst_18 {dimension_numbers = #tpu.dot_dimension_numbers<[1], [0], [0], [1], [0, 0, 1, 1], [], []>} : vector<64x32xbf16>, vector<32x4xbf16>, vector<64x4xf32> -> vector<64x4xf32>
    %32 = vector.extract_strided_slice %28 {offsets = [0, 0], sizes = [32, 64], strides = [1, 1]} : vector<64x64xf32> to vector<32x64xf32>
    %33 = vector.extract_strided_slice %28 {offsets = [32, 0], sizes = [32, 64], strides = [1, 1]} : vector<64x64xf32> to vector<32x64xf32>
    %34 = vector.extract_strided_slice %31 {offsets = [0, 0], sizes = [32, 4], strides = [1, 1]} : vector<64x4xf32> to vector<32x4xf32>
    %35 = vector.extract_strided_slice %31 {offsets = [32, 0], sizes = [32, 4], strides = [1, 1]} : vector<64x4xf32> to vector<32x4xf32>
    %36 = arith.subf %34, %35 : vector<32x4xf32>
    %cst_19 = arith.constant -6.000000e+01 : f32
    %cst_20 = arith.constant 6.000000e+01 : f32
    %37 = vector.broadcast %cst_19 : f32 to vector<32x4xf32>
    %38 = arith.maximumf %37, %36 : vector<32x4xf32>
    %39 = vector.broadcast %cst_20 : f32 to vector<32x4xf32>
    %40 = arith.minimumf %39, %38 : vector<32x4xf32>
    %cst_21 = arith.constant 0.000000e+00 : f32
    %41 = vector.broadcast %cst_21 : f32 to vector<32x4xf32>
    %42 = arith.subf %41, %40 : vector<32x4xf32>
    %43 = math.exp %42 : vector<32x4xf32>
    %cst_22 = arith.constant 1.000000e+00 : f32
    %44 = vector.broadcast %cst_22 : f32 to vector<32x4xf32>
    %45 = arith.addf %44, %43 : vector<32x4xf32>
    %46 = tpu.reciprocal %45 {approx = true} : vector<32x4xf32> -> vector<32x4xf32>
    %c0_23 = arith.constant 0 : index
    %c0_24 = arith.constant 0 : index
    %47 = vector.load %arg7[%c0_23, %c0_24] : memref<4x64xf32, #tpu.memory_space<vmem>>, vector<4x64xf32>
    %cst_25 = arith.constant dense<0.000000e+00> : vector<32x64xf32>
    %48 = tpu.matmul %46, %47, %cst_25 {dimension_numbers = #tpu.dot_dimension_numbers<[1], [0], [0], [1], [0, 0, 1, 1], [], []>} : vector<32x4xf32>, vector<4x64xf32>, vector<32x64xf32> -> vector<32x64xf32>
    %49 = arith.subf %32, %33 : vector<32x64xf32>
    %50 = arith.mulf %48, %49 : vector<32x64xf32>
    %51 = arith.addf %33, %50 : vector<32x64xf32>
    %52 = arith.truncf %51 : vector<32x64xf32> to vector<32x64xbf16>
    %c0_26 = arith.constant 0 : index
    %c0_27 = arith.constant 0 : index
    %53 = vector.load %arg8[%c0_26, %c0_27] : memref<64x64xbf16, #tpu.memory_space<vmem>>, vector<64x64xbf16>
    %cst_28 = arith.constant dense<0.000000e+00> : vector<32x64xf32>
    %54 = tpu.matmul %52, %53, %cst_28 {dimension_numbers = #tpu.dot_dimension_numbers<[1], [0], [0], [1], [0, 0, 1, 1], [], []>} : vector<32x64xbf16>, vector<64x64xbf16>, vector<32x64xf32> -> vector<32x64xf32>
    %c0_29 = arith.constant 0 : index
    %c0_30 = arith.constant 0 : index
    %55 = vector.load %arg9[%c0_29, %c0_30] : memref<1x64xf32, #tpu.memory_space<vmem>>, vector<1x64xf32>
    %56 = vector.broadcast %55 : vector<1x64xf32> to vector<32x64xf32>
    %57 = arith.addf %54, %56 : vector<32x64xf32>
    %58 = tpu.transpose %57, [1, 0] : vector<32x64xf32> -> vector<64x32xf32>
    %c0_31 = arith.constant 0 : index
    %c0_32 = arith.constant 0 : index
    %c0_33 = arith.constant 0 : index
    %59 = vector.load %arg10[%c0_31, %c0_32, %c0_33] : memref<1x64x32xf32, #tpu.memory_space<vmem>>, vector<1x64x32xf32>
    %60 = vector.shape_cast %59 : vector<1x64x32xf32> to vector<64x32xf32>
    %61 = vector.shape_cast %58 : vector<64x32xf32> to vector<1x64x32xf32>
    tpu.vector_store %arg10[%c0_31, %c0_32, %c0_33], %61 {strides = array<i32>} : memref<1x64x32xf32, #tpu.memory_space<vmem>>, vector<1x64x32xf32>,
    return
  }
  func.func @transform_0(%arg0: i32, %arg1: i32) -> (i32, i32, i32) {
    %c0_i32 = arith.constant 0 : i32
    %c0_i32_0 = arith.constant 0 : i32
    return %arg0, %arg1, %c0_i32 : i32, i32, i32
  }
  func.func @transform_1(%arg0: i32, %arg1: i32) -> (i32, i32, i32) {
    %c0_i32 = arith.constant 0 : i32
    %c0_i32_0 = arith.constant 0 : i32
    %c0_i32_1 = arith.constant 0 : i32
    return %arg0, %c0_i32, %c0_i32_0 : i32, i32, i32
  }
  func.func @transform_2(%arg0: i32, %arg1: i32) -> (i32, i32, i32) {
    %c0_i32 = arith.constant 0 : i32
    %c0_i32_0 = arith.constant 0 : i32
    %c0_i32_1 = arith.constant 0 : i32
    return %arg0, %c0_i32, %c0_i32_0 : i32, i32, i32
  }
  func.func @transform_3(%arg0: i32, %arg1: i32) -> (i32, i32) {
    %c0_i32 = arith.constant 0 : i32
    %c0_i32_0 = arith.constant 0 : i32
    %c0_i32_1 = arith.constant 0 : i32
    return %c0_i32, %c0_i32_0 : i32, i32
  }
  func.func @transform_4(%arg0: i32, %arg1: i32) -> (i32, i32, i32) {
    %c0_i32 = arith.constant 0 : i32
    %c0_i32_0 = arith.constant 0 : i32
    %c0_i32_1 = arith.constant 0 : i32
    return %arg0, %c0_i32, %c0_i32_0 : i32, i32, i32
  }
  func.func @transform_5(%arg0: i32, %arg1: i32) -> (i32, i32) {
    %c0_i32 = arith.constant 0 : i32
    %c0_i32_0 = arith.constant 0 : i32
    %c0_i32_1 = arith.constant 0 : i32
    return %c0_i32, %c0_i32_0 : i32, i32
  }
  func.func @transform_6(%arg0: i32, %arg1: i32) -> (i32, i32) {
    %c0_i32 = arith.constant 0 : i32
    %c0_i32_0 = arith.constant 0 : i32
    %c0_i32_1 = arith.constant 0 : i32
    return %c0_i32, %c0_i32_0 : i32, i32
  }
  func.func @transform_7(%arg0: i32, %arg1: i32) -> (i32, i32) {
    %c0_i32 = arith.constant 0 : i32
    %c0_i32_0 = arith.constant 0 : i32
    %c0_i32_1 = arith.constant 0 : i32
    return %c0_i32, %c0_i32_0 : i32, i32
  }
  func.func @transform_8(%arg0: i32, %arg1: i32) -> (i32, i32, i32) {
    %c0_i32 = arith.constant 0 : i32
    %c0_i32_0 = arith.constant 0 : i32
    return %arg0, %c0_i32, %arg1 : i32, i32, i32
  }
}

</mosaic_0001>

<bundles_post_ra>
// kernel: tpu_custom_call.1
= control target key start
LH: loop header
LB: loop body
LE: loop exit
PB: predicated region body
PF: predicated region fallthrough
CT: control target
= control target key end

     0   :  { %s1357_s27 = smov 0   ;;  %s1359_s28 = smov 0   ;;  %s1528_s0 = inlined_call_operand.vmem [shape: f32[2,64,32], index: 0, kind: input, shape index: {}]   ;;  %s1529_s1 = inlined_call_operand.vmem [shape: f32[2,1,32], index: 1, kind: input, shape index: {}]   ;;  %s1530_s2 = inlined_call_operand.vmem [shape: f32[2,1,32], index: 2, kind: input, shape index: {}]   ;;  %s1531_s3 = inlined_call_operand.vmem [shape: bf16[32,64], index: 3, kind: input, shape index: {}]   ;;  %s1532_s4 = inlined_call_operand.vmem [shape: bf16[2,32,4], index: 4, kind: input, shape index: {}]   ;;  %s1533_s5 = inlined_call_operand.vmem [shape: f32[4,64], index: 5, kind: input, shape index: {}]   ;;  %s1534_s6 = inlined_call_operand.vmem [shape: bf16[64,64], index: 6, kind: input, shape index: {}]   ;;  %s1535_s7 = inlined_call_operand.vmem [shape: f32[1,64], index: 7, kind: input, shape index: {}]   ;;  %s1536_s8 = inlined_call_operand.vmem [shape: f32[2,64,32], index: 8, kind: output, shape index: {}]  }
   0x1   :  { %s1361_s29 = smov 0  }
   0x2 LB: > { %s30_s30 = sadd.s32 1, %s1306_s28  ;;  %p1114_p0 = scmp.ge.s32.totalorder %s1310_s29, 1  ;;  %s1310_s29 = sphi %s1361_s29, %s18_s29   ;;  %s1306_s28 = sphi %s1359_s28, %s1538_s28   ;;  %s1302_s27 = sphi %s1357_s27, %s1537_s27  }
   0x3   : > { %p32_p1 = scmp.ge.s32.totalorder %s30_s30, 2  ;;  %p309_p2 = scmp.lt.s32.totalorder %s1310_s29, 3 }
   0x5   : > { %s1540_s30 = smov (%p32_p1, %s30_s30), 0  ;;  %p310_p3 = pnand %p1114_p0, %p309_p2 }
   0x6   : > { %p362_p4 = scmp.lt.s32.totalorder (!%p310_p3), %s1302_s27, 1  ;;  %vm399_vm0 = vcmask (!%p310_p3), 261120   ;;  %v1248_v56 = vld [vmem:[%s1531_s3] sm:$0xff] (!%p310_p3)   ;;  %v1250_v58 = vld [vmem:[%s1531_s3 + $0x8] sm:$0xff] (!%p310_p3)   ;;  %vm759_vm1 = vcmask (!%p310_p3), 1043456   ;;  %vm746_vm2 = vcmask (!%p310_p3), 31744  }
   0x7   : > { %313 = sbr.rel (%p310_p3) target bundleno = 1192 (0x4a8), region = 52  ;;  %1179 = vmatprep.subr.bf16.mxu0 (!%p310_p3), %v1248_v56  ;;  %vm901_vm3 = vcmask (!%p310_p3), 523264  }
   0x8   : > { %1180 = vmatpush3.bf16.msra.mxu0 (!%p310_p3), %v1248_v56 }
   0x9   : > { %1181 = vmatprep.subr.bf16.mxu0 (!%p310_p3), %v1250_v58 }
   0xc   : > { %1182 = vmatpush3.bf16.msra.mxu0 (!%p310_p3), %v1250_v58 }
   0xe   : > { %s1542_s27 = smov (!%p362_p4, %s1302_s27), 1 }
   0xf   : > { %s1153_s9 = sshll.u32 %s1542_s27, 6  ;;  %s1154_s13 = sshll.u32 %s1542_s27, 4 }
  0x10   : > { %s369_s12 = scalar_lea.vmem %s1528_s0, %s1153_s9  ;;  %s381_s16 = scalar_lea.vmem %s1532_s4, %s1154_s13 }
  0x11   : > { %v391_v0 = vld [vmem:[%s369_s12] sm:$0xff]  ;;  %v393_v1 = vld [vmem:[%s369_s12 + $0x10] sm:$0xff]  ;;  %v392_v2 = vld [vmem:[%s369_s12 + $0x8] sm:$0xff]  ;;  %s373_s23 = scalar_lea.vmem %s1529_s1, %s1542_s27  ;;  %s376_s26 = scalar_lea.vmem %s1530_s2, %s1542_s27 }
  0x12   : > { %v400_v3 = vsel %vm399_vm0, %v391_v0, 0.0  ;;  %v406_v4 = vsel %vm399_vm0, %v393_v1, 0.0  ;;  %v394_v5 = vld [vmem:[%s369_s12 + $0x18] sm:$0xff]  ;;  %v403_v6 = vsel %vm399_vm0, %v392_v2, 0.0  ;;  %v395_v8 = vld [vmem:[%s369_s12 + $0x20] sm:$0xff]  ;;  %v396_v9 = vld [vmem:[%s369_s12 + $0x28] sm:$0xff]  ;;  %s389_s24 = scalar_lea.vmem %s1536_s8, %s1153_s9 }
  0x13   : > { %401 = vadd.xlane.f32.xlu0 %v400_v3  ;;  %407 = vadd.xlane.f32.xlu1 %v406_v4  ;;  %v409_v7 = vsel %vm399_vm0, %v394_v5, 0.0  ;;  %v412_v10 = vsel %vm399_vm0, %v395_v8, 0.0  ;;  %v415_v11 = vsel %vm399_vm0, %v396_v9, 0.0  ;;  %v397_v12 = vld [vmem:[%s369_s12 + $0x30] sm:$0xff]  ;;  %v398_v13 = vld [vmem:[%s369_s12 + $0x38] sm:$0xff]  ;;  %v1249_v57 = vld [vmem:[%s381_s16] sm:$0xff]  }
  0x14   : > { %v418_v14 = vsel %vm399_vm0, %v397_v12, 0.0  ;;  %v421_v15 = vsel %vm399_vm0, %v398_v13, 0.0  ;;  %1191 = vmatprep.subr.bf16.mxu1 %v1249_v57  ;;  %v1251_v59 = vld [vmem:[%s381_s16 + $0x8] sm:$0xff]  }
  0x15   : > { %1192 = vmatpush3.bf16.msra.mxu1 %v1249_v57 }
  0x16   : > { %1193 = vmatprep.subr.bf16.mxu1 %v1251_v59 }
  0x17   : > { %404 = vadd.xlane.f32.xlu0 %v403_v6  ;;  %410 = vadd.xlane.f32.xlu1 %v409_v7 }
  0x19   : > { %1194 = vmatpush3.bf16.msra.mxu1 %v1251_v59  ;;  %v1252_v59 = vld [vmem:[%s1534_s6] sm:$0xff]  }
  0x1a   : > { %1211 = vmatprep.subr.bf16.mxu1 %v1252_v59 }
  0x1b   : > { %413 = vadd.xlane.f32.xlu0 %v412_v10  ;;  %416 = vadd.xlane.f32.xlu1 %v415_v11 }
  0x1f   : > { %419 = vadd.xlane.f32.xlu0 %v418_v14  ;;  %422 = vadd.xlane.f32.xlu1 %v421_v15 }
  0xa0   : > { %v402_v16 = vpop.xlane.xlu0 %401  ;;  %v408_v17 = vpop.xlane.xlu1 %407 }
  0xa1   : > { %v425_v18 = vmul.f32 0.03125, %v402_v16  ;;  %v427_v19 = vmul.f32 0.03125, %v408_v17 }
  0xa3   : > { %v1391_v20 = vsub.f32 %v391_v0, %v425_v18  ;;  %v1393_v21 = vsub.f32 %v393_v1, %v427_v19 }
  0xa4   : > { %v405_v22 = vpop.xlane.xlu0 %404  ;;  %v411_v23 = vpop.xlane.xlu1 %410 }
  0xa5   : > { %v426_v24 = vmul.f32 0.03125, %v405_v22  ;;  %v428_v25 = vmul.f32 0.03125, %v411_v23  ;;  %v441_v26 = vmul.f32 %v1391_v20, %v1391_v20  ;;  %v443_v27 = vmul.f32 %v1393_v21, %v1393_v21  ;;  %v1121_v23 = vld [vmem:[%s373_s23] ss:$0 sm:$0xff] }
  0xa7   : > { %v1399_v28 = vsub.f32 %v392_v2, %v426_v24  ;;  %v1401_v29 = vsub.f32 %v394_v5, %v428_v25  ;;  %v449_v30 = vsel %vm399_vm0, %v441_v26, 0.0  ;;  %v455_v33 = vsel %vm399_vm0, %v443_v27, 0.0 }
  0xa8   : > { %450 = vadd.xlane.f32.xlu0 %v449_v30  ;;  %v414_v31 = vpop.xlane.xlu0 %413  ;;  %v417_v32 = vpop.xlane.xlu1 %416 }
  0xa9   : > { %v429_v34 = vmul.f32 0.03125, %v414_v31  ;;  %v430_v35 = vmul.f32 0.03125, %v417_v32  ;;  %v442_v36 = vmul.f32 %v1399_v28, %v1399_v28  ;;  %v444_v37 = vmul.f32 %v1401_v29, %v1401_v29  ;;  %v1122_v32 = vld [vmem:[%s376_s26] ss:$0 sm:$0xff] }
  0xab   : > { %v1409_v38 = vsub.f32 %v395_v8, %v429_v34  ;;  %v1411_v39 = vsub.f32 %v396_v9, %v430_v35  ;;  %v452_v40 = vsel %vm399_vm0, %v442_v36, 0.0  ;;  %v458_v43 = vsel %vm399_vm0, %v444_v37, 0.0 }
  0xac   : > { %456 = vadd.xlane.f32.xlu0 %v455_v33  ;;  %453 = vadd.xlane.f32.xlu1 %v452_v40  ;;  %v420_v41 = vpop.xlane.xlu0 %419  ;;  %v423_v42 = vpop.xlane.xlu1 %422 }
  0xad   : > { %v431_v44 = vmul.f32 0.03125, %v420_v41  ;;  %v432_v45 = vmul.f32 0.03125, %v423_v42  ;;  %v445_v46 = vmul.f32 %v1409_v38, %v1409_v38  ;;  %v446_v47 = vmul.f32 %v1411_v39, %v1411_v39 }
  0xaf   : > { %v1419_v48 = vsub.f32 %v397_v12, %v431_v44  ;;  %v1421_v49 = vsub.f32 %v398_v13, %v432_v45  ;;  %v461_v50 = vsel %vm399_vm0, %v445_v46, 0.0  ;;  %v464_v51 = vsel %vm399_vm0, %v446_v47, 0.0 }
  0xb0   : > { %459 = vadd.xlane.f32.xlu1 %v458_v43  ;;  %462 = vadd.xlane.f32.xlu0 %v461_v50 }
  0xb1   : > { %v447_v52 = vmul.f32 %v1419_v48, %v1419_v48  ;;  %v448_v53 = vmul.f32 %v1421_v49, %v1421_v49 }
  0xb3   : > { %v467_v54 = vsel %vm399_vm0, %v447_v52, 0.0  ;;  %v470_v55 = vsel %vm399_vm0, %v448_v53, 0.0 }
  0xb4   : > { %465 = vadd.xlane.f32.xlu1 %v464_v51  ;;  %468 = vadd.xlane.f32.xlu0 %v467_v54 }
  0xb8   : > { %471 = vadd.xlane.f32.xlu1 %v470_v55 }
 0x135   : > { %v451_v60 = vpop.xlane.xlu0 %450 }
 0x136   : > { %v473_v61 = vmul.f32 0.03125, %v451_v60  ;;  %v1253_v60 = vld [vmem:[%s1534_s6 + $0x8] sm:$0xff]  }
 0x138   : > { %v481_v62 = vadd.f32 1e-06, %v473_v61 }
 0x139   : > { %v454_v63 = vpop.xlane.xlu1 %453  ;;  %v457_v0 = vpop.xlane.xlu0 %456 }
 0x13a   : > { %1256 = vrsqrt.f32 %v481_v62  ;;  %v474_v1 = vmul.f32 0.03125, %v454_v63  ;;  %v475_v2 = vmul.f32 0.03125, %v457_v0 }
 0x13c   : > { %v482_v3 = vadd.f32 1e-06, %v474_v1  ;;  %v483_v4 = vadd.f32 1e-06, %v475_v2 }
 0x13d   : > { %v460_v5 = vpop.xlane.xlu1 %459  ;;  %v463_v6 = vpop.xlane.xlu0 %462 }
 0x13e   : > { %1258 = vrsqrt.f32 %v482_v3  ;;  %v476_v7 = vmul.f32 0.03125, %v460_v5  ;;  %v477_v8 = vmul.f32 0.03125, %v463_v6 }
 0x13f   : > { %1260 = vrsqrt.f32 %v483_v4 }
 0x140   : > { %v484_v9 = vadd.f32 1e-06, %v476_v7  ;;  %v485_v10 = vadd.f32 1e-06, %v477_v8 }
 0x141   : > { %v466_v11 = vpop.xlane.xlu1 %465  ;;  %v469_v12 = vpop.xlane.xlu0 %468 }
 0x142   : > { %1262 = vrsqrt.f32 %v484_v9  ;;  %v478_v13 = vmul.f32 0.03125, %v466_v11  ;;  %v479_v14 = vmul.f32 0.03125, %v469_v12 }
 0x143   : > { %1264 = vrsqrt.f32 %v485_v10 }
 0x144   : > { %v1257_v15 = vpop.eup %1256  ;;  %v486_v16 = vadd.f32 1e-06, %v478_v13  ;;  %v487_v17 = vadd.f32 1e-06, %v479_v14 }
 0x145   : > { %v472_v18 = vpop.xlane.xlu1 %471  ;;  %v497_v19 = vmul.f32 %v1257_v15, %v1391_v20 }
 0x146   : > { %1266 = vrsqrt.f32 %v486_v16  ;;  %v480_v22 = vmul.f32 0.03125, %v472_v18 }
 0x147   : > { %1268 = vrsqrt.f32 %v487_v17  ;;  %v512_v30 = vmul.f32 %v1121_v23, %v497_v19 }
 0x148   : > { %v1259_v24 = vpop.eup %1258  ;;  %v488_v25 = vadd.f32 1e-06, %v480_v22 }
 0x149   : > { %v1261_v26 = vpop.eup %1260  ;;  %v498_v27 = vmul.f32 %v1259_v24, %v1399_v28  ;;  %v527_v36 = vadd.f32 %v1122_v32, %v512_v30 }
 0x14a   : > { %v499_v31 = vmul.f32 %v1261_v26, %v1393_v21  ;;  %1270 = vrsqrt.f32 %v488_v25 }
 0x14b   : > { %v513_v33 = vmul.f32 %v1121_v23, %v498_v27 }
 0x14c   : > { %v1263_v20 = vpop.eup %1262  ;;  %v514_v40 = vmul.f32 %v1121_v23, %v499_v31 }
 0x14d   : > { %v1265_v34 = vpop.eup %1264  ;;  %v500_v35 = vmul.f32 %v1263_v20, %v1401_v29  ;;  %v528_v37 = vadd.f32 %v1122_v32, %v513_v33 }
 0x14e   : > { %v501_v41 = vmul.f32 %v1265_v34, %v1409_v38  ;;  %v529_v21 = vadd.f32 %v1122_v32, %v514_v40 }
 0x14f   : > { %v535_v42 = vpack.c.bf16 %v528_v37, %v527_v36  ;;  %v515_v43 = vmul.f32 %v1121_v23, %v500_v35 }
 0x150   : > { %v1267_v44 = vpop.eup %1266  ;;  %v516_v45 = vmul.f32 %v1121_v23, %v501_v41 }
 0x151   : > { %v1269_v28 = vpop.eup %1268  ;;  %v502_v46 = vmul.f32 %v1267_v44, %v1411_v39  ;;  %1183 = vmatprep.mubr.msk.bf16.mxu0 %vm399_vm0, %v535_v42  ;;  %1195 = vmatprep.mubr.msk.bf16.mxu1 %vm399_vm0, %v535_v42  ;;  %v530_v47 = vadd.f32 %v1122_v32, %v515_v43 }
 0x152   : > { %v503_v29 = vmul.f32 %v1269_v28, %v1419_v48  ;;  %v531_v53 = vadd.f32 %v1122_v32, %v516_v45 }
 0x153   : > { %v536_v50 = vpack.c.bf16 %v530_v47, %v529_v21  ;;  %v517_v51 = vmul.f32 %v1121_v23, %v502_v46 }
 0x154   : > { %v1271_v52 = vpop.eup %1270  ;;  %v518_v39 = vmul.f32 %v1121_v23, %v503_v29  ;;  %v1254_v29 = vld [vmem:[%s1534_s6 + $0x10] sm:$0xff]  }
 0x155   : > { %v504_v38 = vmul.f32 %v1271_v52, %v1421_v49  ;;  %1184 = vmatmul.mubr.msk.bf16.vlgmr.msra.gmra.mrb[0].mxu0 %vm399_vm0, %v536_v50  ;;  %1196 = vmatmul.mubr.msk.bf16.vlgmr.msra.gmra.mrb[0].mxu1 %vm399_vm0, %v536_v50  ;;  %v532_v54 = vadd.f32 %v1122_v32, %v517_v51  ;;  %v745_v49 = vld [vmem:[%s1533_s5] sm:$0xf]  ;;  %v1255_v50 = vld [vmem:[%s1534_s6 + $0x18] sm:$0xff]  }
 0x156   : > { %v533_v57 = vadd.f32 %v1122_v32, %v518_v39  ;;  %1203 = vmatprep.subr.msk.mxu0 %vm759_vm1, %v745_v49  ;;  %1212 = vmatpush3.bf16.msra.mxu1 %v1252_v59 }
 0x157   : > { %v537_v55 = vpack.c.bf16 %v532_v54, %v531_v53  ;;  %v519_v56 = vmul.f32 %v1121_v23, %v504_v38  ;;  %1204 = vmatpush3.msk.msra.mxu0 %vm759_vm1, %v745_v49  ;;  %1213 = vmatprep.subr.bf16.mxu1 %v1253_v60 }
 0x159   : > { %1187 = vmatprep.mubr.msk.bf16.mxu0 %vm399_vm0, %v537_v55  ;;  %1199 = vmatprep.mubr.msk.bf16.mxu1 %vm399_vm0, %v537_v55  ;;  %v534_v48 = vadd.f32 %v1122_v32, %v519_v56 }
 0x15a   : > { %1214 = vmatpush3.bf16.msra.mxu1 %v1253_v60 }
 0x15b   : > { %v538_v58 = vpack.c.bf16 %v534_v48, %v533_v57  ;;  %1215 = vmatprep.subr.bf16.mxu1 %v1254_v29 }
 0x15d   : > { %1188 = vmatmul.mubr.msk.bf16.gmra.mrb[4].mxu0 %vm399_vm0, %v538_v58  ;;  %1200 = vmatmul.mubr.msk.bf16.gmra.mrb[4].mxu1 %vm399_vm0, %v538_v58 }
 0x15e   : > { %1216 = vmatpush3.bf16.msra.mxu1 %v1254_v29 }
 0x15f   : > { %1217 = vmatprep.subr.bf16.mxu1 %v1255_v50 }
 0x162   : > { %1218 = vmatpush3.bf16.msra.mxu1 %v1255_v50 }
 0x228   : > { %v1474_v61 = vpop.f32.mrb[0].mxu0  ;;  %v1197_v62 = vpop.f32.mrb[0].mxu1 }
 0x229   : > { %v1476_v63 = vpop.f32.mrb[1].mxu0  ;;  %v682_v0 = vpop.f32.mrb[1].mxu1 }
 0x22a   : > { %v1478_v1 = vpop.f32.mrb[2].mxu0  ;;  %v1198_v2 = vpop.f32.mrb[2].mxu1 }
 0x22b   : > { %v1480_v3 = vpop.f32.mrb[3].mxu0  ;;  %v685_v4 = vpop.f32.mrb[3].mxu1 }
 0x230   : > { %v1482_v5 = vpop.f32.mrb[4].mxu0  ;;  %v1201_v6 = vpop.f32.mrb[4].mxu1 }
 0x231   : > { %v850_v7 = vsub.f32 %v1474_v61, %v1482_v5  ;;  %v715_v8 = vsub.f32 %v1197_v62, %v1201_v6  ;;  %v617_v9 = vpop.f32.mrb[5].mxu0  ;;  %v698_v10 = vpop.f32.mrb[5].mxu1  ;;  %v1144_v62 = vld [vmem:[%s1535_s7] ss:$0 sm:$0xff] }
 0x232   : > { %v848_v11 = vsub.f32 %v1476_v63, %v617_v9  ;;  %v713_v12 = vsub.f32 %v682_v0, %v698_v10  ;;  %v1487_v13 = vpop.f32.mrb[6].mxu0  ;;  %v1202_v14 = vpop.f32.mrb[6].mxu1 }
 0x233   : > { %v1137_v15 = vclamps-f32 %v715_v8, 60.0  ;;  %v851_v16 = vsub.f32 %v1478_v1, %v1487_v13  ;;  %v716_v17 = vsub.f32 %v1198_v2, %v1202_v14  ;;  %v620_v18 = vpop.f32.mrb[7].mxu0  ;;  %v701_v19 = vpop.f32.mrb[7].mxu1 }
 0x234   : > { %v1135_v22 = vclamps-f32 %v713_v12, 60.0  ;;  %v849_v23 = vsub.f32 %v1480_v3, %v620_v18  ;;  %v714_v24 = vsub.f32 %v685_v4, %v701_v19 }
 0x235   : > { %v727_v25 = vsub.f32 0.0, %v1137_v15  ;;  %v1138_v26 = vclamps-f32 %v716_v17, 60.0 }
 0x236   : > { %v725_v27 = vsub.f32 0.0, %v1135_v22  ;;  %v1136_v30 = vclamps-f32 %v714_v24, 60.0 }
 0x237   : > { %v733_v31 = vmul.f32 1.442695, %v727_v25  ;;  %v728_v32 = vsub.f32 0.0, %v1138_v26 }
 0x238   : > { %v729_v33 = vmul.f32 1.442695, %v725_v27  ;;  %v726_v20 = vsub.f32 0.0, %v1136_v30 }
 0x239   : > { %1272 = vpow2.f32 %v733_v31  ;;  %v735_v34 = vmul.f32 1.442695, %v728_v32 }
 0x23a   : > { %1274 = vpow2.f32 %v729_v33  ;;  %v731_v35 = vmul.f32 1.442695, %v726_v20 }
 0x23b   : > { %1276 = vpow2.f32 %v735_v34 }
 0x23c   : > { %1278 = vpow2.f32 %v731_v35 }
 0x243   : > { %v1273_v36 = vpop.eup %1272 }
 0x244   : > { %v1275_v37 = vpop.eup %1274  ;;  %v739_v43 = vadd.f32 1.0, %v1273_v36 }
 0x245   : > { %v1277_v40 = vpop.eup %1276  ;;  %v737_v41 = vadd.f32 1.0, %v1275_v37 }
 0x246   : > { %v1279_v42 = vpop.eup %1278  ;;  %v740_v45 = vadd.f32 1.0, %v1277_v40 }
 0x247   : > { %1280 = vrcp.f32 %v737_v41  ;;  %v738_v44 = vadd.f32 1.0, %v1279_v42 }
 0x249   : > { %1282 = vrcp.f32 %v738_v44 }
 0x24a   : > { %1284 = vrcp.f32 %v739_v43 }
 0x24b   : > { %1286 = vrcp.f32 %v740_v45 }
 0x251   : > { %v1281_v28 = vpop.eup %1280 }
 0x252   : > { %1205 = vmatprep.mubr.msk.f32.mxu0 %vm746_vm2, %v1281_v28 }
 0x253   : > { %v1283_v46 = vpop.eup %1282 }
 0x254   : > { %v1285_v21 = vpop.eup %1284  ;;  %1206 = vmatmul.mubr.msk.f32.vlgmr.msra.gmra.mrb[8].mxu0 %vm746_vm2, %v1283_v46 }
 0x255   : > { %1208 = vmatprep.mubr.msk.f32.mxu0 %vm746_vm2, %v1285_v21  ;;  %v1287_v47 = vpop.eup %1286 }
 0x258   : > { %1209 = vmatmul.mubr.msk.f32.gmra.mrb[10].mxu0 %vm746_vm2, %v1287_v47 }
 0x327   : > { %v1207_v51 = vpop.f32.mrb[8].mxu0 }
 0x328   : > { %v853_v52 = vmul.f32 %v1207_v51, %v849_v23  ;;  %v829_v53 = vpop.f32.mrb[9].mxu0 }
 0x329   : > { %v852_v38 = vmul.f32 %v848_v11, %v829_v53 }
 0x32a   : > { %v857_v54 = vadd.f32 %v853_v52, %v620_v18 }
 0x32b   : > { %v856_v39 = vadd.f32 %v852_v38, %v617_v9  ;;  %v1210_v55 = vpop.f32.mrb[10].mxu0 }
 0x32c   : > { %v855_v56 = vmul.f32 %v1210_v55, %v851_v16  ;;  %v839_v57 = vpop.f32.mrb[11].mxu0 }
 0x32d   : > { %v860_v48 = vpack.c.bf16 %v857_v54, %v856_v39  ;;  %v854_v58 = vmul.f32 %v850_v7, %v839_v57 }
 0x32e   : > { %v859_v49 = vadd.f32 %v1487_v13, %v855_v56 }
 0x32f   : > { %v858_v59 = vadd.f32 %v1482_v5, %v854_v58  ;;  %1219 = vmatprep.mubr.msk.bf16.mxu1 %vm901_vm3, %v860_v48 }
 0x331   : > { %v861_v60 = vpack.c.bf16 %v859_v49, %v858_v59 }
 0x333   : > { %1220 = vmatmul.mubr.msk.bf16.vlgmr.msra.gmra.mrb[8].mxu1 %vm901_vm3, %v861_v60 }
 0x406   : > { %v1221_v63 = vpop.f32.mrb[8].mxu1 }
 0x407   : > { %v942_v0 = vpop.f32.mrb[9].mxu1  ;;  %v951_v4 = vadd.f32 %v1221_v63, %v1144_v62 }
 0x408   : > { %v943_v1 = vadd.f32 %v1144_v62, %v942_v0  ;;  %v1222_v2 = vpop.f32.mrb[10].mxu1 }
 0x409   : > { %v945_v3 = vpop.f32.mrb[11].mxu1  ;;  %v954_v6 = vadd.f32 %v1222_v2, %v1144_v62 }
 0x40a   : > { %957 = vxpose.xlu0.b32.start [1/4] (short) (narrow) %v943_v1, 64  ;;  %v946_v61 = vadd.f32 %v1144_v62, %v945_v3 }
 0x40e   : > { %958 = vxpose.xlu0.b32.cont [2/4] (short) (narrow) %v946_v61, 64 }
 0x412   : > { %959 = vxpose.xlu0.b32.cont [3/4] (short) (narrow) %v951_v4, 64 }
 0x416   : > { %960 = vxpose.xlu0.b32.end [4/4] (short) (narrow) %v954_v6, 64 }
 0x48a   : > { %v973_v5 = vpop.trf.xlu0 }
 0x48b   : > { %989 = vst.msk [vmem:[%s389_s24] sm:$0xff] %vm399_vm0, %v973_v5 }
 0x48e   : > { %v974_v7 = vpop.trf.xlu0 }
 0x48f   : > { %990 = vst.msk [vmem:[%s389_s24 + $0x8] sm:$0xff] %vm399_vm0, %v974_v7 }
 0x492   : > { %v975_v8 = vpop.trf.xlu0 }
 0x493   : > { %991 = vst.msk [vmem:[%s389_s24 + $0x10] sm:$0xff] %vm399_vm0, %v975_v8 }
 0x496   : > { %v976_v9 = vpop.trf.xlu0 }
 0x497   : > { %992 = vst.msk [vmem:[%s389_s24 + $0x18] sm:$0xff] %vm399_vm0, %v976_v9 }
 0x49a   : > { %v977_v10 = vpop.trf.xlu0 }
 0x49b   : > { %993 = vst.msk [vmem:[%s389_s24 + $0x20] sm:$0xff] %vm399_vm0, %v977_v10 }
 0x49e   : > { %v978_v11 = vpop.trf.xlu0 }
 0x49f   : > { %994 = vst.msk [vmem:[%s389_s24 + $0x28] sm:$0xff] %vm399_vm0, %v978_v11 }
 0x4a2   : > { %v979_v12 = vpop.trf.xlu0 }
 0x4a3   : > { %995 = vst.msk [vmem:[%s389_s24 + $0x30] sm:$0xff] %vm399_vm0, %v979_v12 }
 0x4a6   : > { %v980_v13 = vpop.trf.xlu0 }
 0x4a7   : > { %996 = vst.msk [vmem:[%s389_s24 + $0x38] sm:$0xff] %vm399_vm0, %v980_v13 }
 0x4a8 PF: > { %s18_s29 = sadd.s32 1, %s1310_s29   ;;  %s1537_s27 = smov %s1306_s28 }
 0x4a9   : > { %p15_p5 = scmp.ge.s32.totalorder %s18_s29, 4   ;;  %s1538_s28 = smov %s1540_s30 }
 0x4ab   :  { %17 = sbr.rel (!%p15_p5) target bundleno = 2 (0x2), region = 91 }

</bundles_post_ra>
